<compile_context>
chip_gen: v5e
topology: v5e:2x2
jax: 0.10.0
libtpu: 0.0.40
codegen_flags: <defaults>
</compile_context>

<pallas_src>
import functools

import jax
import jax.numpy as jnp
from jax import lax
from jax.experimental import pallas as pl
from jax.experimental.pallas import tpu as pltpu


def _round_up(x: int, m: int) -> int:
    return (x + m - 1) // m * m


def mean_pooling_tower_kernel(mids_ref, emb_ref, w1_ref, b1_ref, w2_ref, b2_ref,
                              out_ref, acc_ref, *, s_chunk):
    # Grid = (batch tiles, vocab tiles); the vocab axis is the K-reduction.
    #   mids_ref: (TB, Sp) int32  pre-masked ids (padding -> -1), resident over K
    #   emb_ref:  (TV, Ep)        streamed vocab tile of the embedding table
    #   w1_ref:   (Ep, Hp)        b1_ref: (1, Hp)
    #   w2_ref:   (Hp, Hp)        b2_ref: (1, Hp)
    #   out_ref:  (TB, Hp) f32    written once, on the last vocab tile
    #   acc_ref:  (TB, Ep) f32    VMEM scratch: running masked embedding sum
    k = pl.program_id(1)
    nk = pl.num_programs(1)
    tb, sp = mids_ref.shape
    tv = emb_ref.shape[0]

    # Token counts must be exactly representable: bf16 is exact up to 256.
    cdtype = emb_ref.dtype
    if sp > 256 and cdtype == jnp.bfloat16:
        cdtype = jnp.float32

    @pl.when(k == 0)
    def _init():
        acc_ref[...] = jnp.zeros_like(acc_ref)

    # Vocab ids covered by this tile: tiny (1,1,TV) iota shifted by k*TV
    # (cheaper than offsetting the full (TB,SC,TV) tensor or the ids).
    vvals = k * tv + lax.broadcasted_iota(jnp.int32, (1, 1, tv), 2)

    # Build per-row token counts for this vocab tile in S-chunks so the
    # one-hot temporary stays a few hundred KiB instead of (TB, S, TV).
    counts = jnp.zeros((tb, tv), dtype=cdtype)
    for c in range(sp // s_chunk):                       # static trip count
        chunk = mids_ref[:, c * s_chunk:(c + 1) * s_chunk]      # (TB, SC) int32
        onehot = (chunk[:, :, None] == vvals).astype(cdtype)    # (TB, SC, TV)
        counts = counts + jnp.sum(onehot, axis=1)

    # Masked embedding sum == counts @ emb_tile (MXU, gather-free, f32 acc).
    acc_ref[...] += jnp.dot(counts, emb_ref[...],
                            preferred_element_type=jnp.float32)

    @pl.when(k == nk - 1)
    def _finalize():
        valid = (mids_ref[...] > 0).astype(jnp.float32)           # (TB, Sp)
        denom = jnp.sum(valid, axis=1, keepdims=True) + 1e-9      # (TB, 1)
        pooled = acc_ref[...] / denom                             # (TB, Ep) f32

        # feed_forward: Linear -> ReLU -> Linear (f32 accumulation on MXU).
        x = pooled.astype(w1_ref.dtype)
        h = jnp.dot(x, w1_ref[...], preferred_element_type=jnp.float32)
        h = jnp.maximum(h + b1_ref[...].astype(jnp.float32), 0.0)
        o = jnp.dot(h.astype(w2_ref.dtype), w2_ref[...],
                    preferred_element_type=jnp.float32)
        o = o + b2_ref[...].astype(jnp.float32)

        # F.normalize(dim=-1): x / max(||x||, 1e-12) == x * rsqrt(max(||x||^2, 1e-24))
        ssq = jnp.sum(o * o, axis=-1, keepdims=True)
        out_ref[...] = (o * lax.rsqrt(jnp.maximum(ssq, 1e-24))).astype(out_ref.dtype)


def prepare_mean_pooling_tower_params(emb_table, w1, b1, w2, b2, *,
                                      vocab_tile=1024,
                                      param_dtype=jnp.bfloat16):
    """Pad + cast the table/weights ONCE (hoisted out of the forward path).

    Zero padding keeps the math identical to the unpadded module: padded
    w/b rows & columns are zero so padded output columns are exactly 0 and
    the L2 norm is unchanged; padded vocab rows never receive counts.
    """
    V, E = emb_table.shape
    assert w1.shape[0] == E
    H = w1.shape[1]
    assert w2.shape == (H, H)
    assert vocab_tile % 128 == 0

    Ep = _round_up(E, 128)                    # lane-dense features
    Hp = _round_up(H, 128)                    # lane-dense output
    TV = min(vocab_tile, _round_up(V, 128))   # vocab (K) tile
    Vp = _round_up(V, TV)

    emb_p = jnp.pad(emb_table.astype(param_dtype), ((0, Vp - V), (0, Ep - E)))
    w1_p = jnp.pad(w1.astype(param_dtype), ((0, Ep - E), (0, Hp - H)))
    b1_p = jnp.pad(b1.astype(param_dtype), (0, Hp - H)).reshape(1, Hp)
    w2_p = jnp.pad(w2.astype(param_dtype), ((0, Hp - H), (0, Hp - H)))
    b2_p = jnp.pad(b2.astype(param_dtype), (0, Hp - H)).reshape(1, Hp)

    return dict(emb=emb_p, w1=w1_p, b1=b1_p, w2=w2_p, b2=b2_p,
                dims=dict(V=V, E=E, H=H, Ep=Ep, Hp=Hp, TV=TV, Vp=Vp))


def mean_pooling_tower(input_ids, params, *, batch_tile=128, s_chunk=8):
    """input_ids: (B, S) int ids (0 == padding). Returns (B, H) f32, L2-normalized."""
    assert batch_tile % 8 == 0
    B, S = input_ids.shape
    d = params["dims"]
    H, Ep, Hp, TV, Vp = d["H"], d["Ep"], d["Hp"], d["TV"], d["Vp"]

    # Batch tile: big enough to fill the MXU / amortize table streaming, but
    # keep >=2 tiles for large batches so both v7x TensorCores get work.
    Bp0 = _round_up(B, 8)
    TB = min(batch_tile, Bp0)
    if Bp0 // TB < 2 and Bp0 >= 64:
        TB = _round_up(Bp0 // 2, 8)
    Bp = _round_up(B, TB)

    # S-chunk size: bound the in-kernel one-hot temporary to ~2 MiB.
    eb = jnp.dtype(params["emb"].dtype).itemsize
    SC = max(1, min(s_chunk, S, (2 << 20) // max(1, TB * TV * eb)))
    Sp = _round_up(S, SC)

    # Per-call ids prep only (tiny): pad, then pre-mask padding ids to -1 so the
    # in-kernel one-hot is a single equality compare.
    ids_p = jnp.pad(jnp.asarray(input_ids, jnp.int32), ((0, Bp - B), (0, Sp - S)))
    mids = jnp.where(ids_p > 0, ids_p, -1)

    grid = (Bp // TB, Vp // TV)

    # Explicit VMEM budget (double-buffered inputs/outputs + scratch + temps),
    # capped at 64 MiB so the same tiling stays legal on v7x.
    est = (2 * TB * Sp * 4 + 2 * TV * Ep * eb
           + 2 * (Ep * Hp + Hp * Hp + 2 * Hp) * eb
           + 2 * TB * Hp * 4 + TB * Ep * 4
           + TB * SC * TV * 4 + 4 * TB * TV * 4)
    vmem_limit = int(min(max(2 * est + (2 << 20), 32 << 20), 64 << 20))

    out = pl.pallas_call(
        functools.partial(mean_pooling_tower_kernel, s_chunk=SC),
        out_shape=jax.ShapeDtypeStruct((Bp, Hp), jnp.float32),
        grid_spec=pltpu.PrefetchScalarGridSpec(
            num_scalar_prefetch=0,
            grid=grid,
            in_specs=[
                pl.BlockSpec((TB, Sp), lambda i, k: (i, 0)),   # ids: per batch tile
                pl.BlockSpec((TV, Ep), lambda i, k: (k, 0)),   # emb: streamed over V
                pl.BlockSpec((Ep, Hp), lambda i, k: (0, 0)),   # weights pinned
                pl.BlockSpec((1, Hp), lambda i, k: (0, 0)),
                pl.BlockSpec((Hp, Hp), lambda i, k: (0, 0)),
                pl.BlockSpec((1, Hp), lambda i, k: (0, 0)),
            ],
            out_specs=pl.BlockSpec((TB, Hp), lambda i, k: (i, 0)),
            scratch_shapes=[pltpu.VMEM((TB, Ep), jnp.float32)],
        ),
        compiler_params=pltpu.CompilerParams(
            dimension_semantics=("parallel", "arbitrary"),
            vmem_limit_bytes=vmem_limit),
    )(mids, params["emb"], params["w1"], params["b1"], params["w2"], params["b2"])

    return out[:B, :H]


def _reference(input_ids, emb_table, w1, b1, w2, b2):
    mask = (input_ids > 0).astype(jnp.float32)[..., None]
    emb = jnp.take(emb_table, input_ids, axis=0) * mask
    pooled = emb.sum(axis=1) / (mask.sum(axis=1) + 1e-9)
    h = jnp.maximum(pooled @ w1 + b1, 0.0)
    o = h @ w2 + b2
    return o / jnp.maximum(
        jnp.sqrt(jnp.sum(o * o, axis=-1, keepdims=True)), 1e-12)


if __name__ == "__main__":
    # Small shapes consistent with the module; chosen so the first run has
    # multiple batch tiles AND multiple vocab (reduction) tiles.
    B, S = 10, 8            # batch, sequence length
    V, E, H = 300, 32, 32   # vocab size, embedding_dim, hidden_dim

    key = jax.random.PRNGKey(0)
    k_ids, k_emb, k_w1, k_b1, k_w2, k_b2 = jax.random.split(key, 6)

    input_ids = jax.random.randint(k_ids, (B, S), 0, V, dtype=jnp.int32)
    # Force padding (id == 0) so the mask matters, incl. one fully-padded row.
    input_ids = input_ids.at[0, 5:].set(0).at[1, 3:].set(0).at[2, :].set(0)

    emb_table = jax.random.normal(k_emb, (V, E), dtype=jnp.float32) * 0.1
    w1 = jax.random.normal(k_w1, (E, H), dtype=jnp.float32) * 0.1
    b1 = jax.random.normal(k_b1, (H,), dtype=jnp.float32) * 0.01
    w2 = jax.random.normal(k_w2, (H, H), dtype=jnp.float32) * 0.1
    b2 = jax.random.normal(k_b2, (H,), dtype=jnp.float32) * 0.01

    ref = _reference(input_ids, emb_table, w1, b1, w2, b2)

    # 1) Exact f32 path; small tiles force a (2 batch x 3 vocab) grid and an
    #    S-chunked (2-chunk) one-hot loop -> exercises init/accumulate/finalize.
    params_f32 = prepare_mean_pooling_tower_params(
        emb_table, w1, b1, w2, b2, vocab_tile=128, param_dtype=jnp.float32)
    out_f32 = mean_pooling_tower(input_ids, params_f32, batch_tile=8, s_chunk=4)
    out_f32 = jax.block_until_ready(out_f32)
    assert out_f32.shape == (B, H)
    assert jnp.allclose(out_f32, ref, atol=1e-5), "f32 kernel mismatch vs reference"

    # 2) Production-style path: bf16 table/weights, default (large) tiles.
    params_bf16 = prepare_mean_pooling_tower_params(
        emb_table, w1, b1, w2, b2, vocab_tile=1024, param_dtype=jnp.bfloat16)
    out_bf16 = mean_pooling_tower(input_ids, params_bf16)
    out_bf16 = jax.block_until_ready(out_bf16)
    assert out_bf16.shape == (B, H)
    assert jnp.allclose(out_bf16, ref, atol=5e-2), "bf16 kernel mismatch vs reference"

    print("KERNEL_OK")
</pallas_src>

<mosaic_0001>
module attributes {stable_mosaic.version = 11 : i64} {
  func.func @mean_pooling_tower_kernel(%arg0: i32, %arg1: i32, %arg2: memref<8x8xi32, #tpu.memory_space<vmem>>, %arg3: memref<128x128xf32, #tpu.memory_space<vmem>>, %arg4: memref<128x128xf32, #tpu.memory_space<vmem>>, %arg5: memref<1x128xf32, #tpu.memory_space<vmem>>, %arg6: memref<128x128xf32, #tpu.memory_space<vmem>>, %arg7: memref<1x128xf32, #tpu.memory_space<vmem>>, %arg8: memref<8x128xf32, #tpu.memory_space<vmem>>, %arg9: memref<8x128xf32, #tpu.memory_space<vmem>>) attributes {dimension_semantics = [#tpu.dimension_semantics<parallel>, #tpu.dimension_semantics<arbitrary>], iteration_bounds = array<i64: 2, 3>, scalar_prefetch = 0 : i64, scratch_operands = 1 : i64, tpu.core_type = #tpu.core_type<tc>, window_params = [{transform_indices = @transform_0, window_bounds = array<i64: 8, 8>}, {transform_indices = @transform_1, window_bounds = array<i64: 128, 128>}, {pipeline_mode = #tpu.pipeline_mode<synchronous>, transform_indices = @transform_2, window_bounds = array<i64: 128, 128>}, {pipeline_mode = #tpu.pipeline_mode<synchronous>, transform_indices = @transform_3, window_bounds = array<i64: 1, 128>}, {pipeline_mode = #tpu.pipeline_mode<synchronous>, transform_indices = @transform_4, window_bounds = array<i64: 128, 128>}, {pipeline_mode = #tpu.pipeline_mode<synchronous>, transform_indices = @transform_5, window_bounds = array<i64: 1, 128>}, {transform_indices = @transform_6, window_bounds = array<i64: 8, 128>}]} {
    %c0_i32 = arith.constant 0 : i32
    %0 = arith.cmpi eq, %arg1, %c0_i32 : i32
    %1 = arith.extui %0 : i1 to i32
    %c0_i32_0 = arith.constant 0 : i32
    %2 = arith.cmpi ne, %1, %c0_i32_0 : i32
    scf.if %2 {
      %cst_13 = arith.constant 0.000000e+00 : f32
      %34 = vector.broadcast %cst_13 : f32 to vector<8x128xf32>
      %c0_14 = arith.constant 0 : index
      %c0_15 = arith.constant 0 : index
      %35 = vector.load %arg9[%c0_14, %c0_15] : memref<8x128xf32, #tpu.memory_space<vmem>>, vector<8x128xf32>
      tpu.vector_store %arg9[%c0_14, %c0_15], %34 {strides = array<i32>} : memref<8x128xf32, #tpu.memory_space<vmem>>, vector<8x128xf32>,
    } else {
    }
    %c128_i32 = arith.constant 128 : i32
    %3 = arith.muli %arg1, %c128_i32 : i32
    %4 = tpu.iota {dimensions = array<i32: 2>} : vector<1x1x128xi32>
    %5 = vector.broadcast %3 : i32 to vector<1x1x128xi32>
    %6 = arith.addi %5, %4 : vector<1x1x128xi32>
    %cst = arith.constant 0.000000e+00 : f32
    %7 = vector.broadcast %cst : f32 to vector<8x128xf32>
    %c0 = arith.constant 0 : index
    %c0_1 = arith.constant 0 : index
    %8 = vector.load %arg2[%c0, %c0_1] : memref<8x8xi32, #tpu.memory_space<vmem>>, vector<8x4xi32>
    %9 = vector.shape_cast %8 : vector<8x4xi32> to vector<8x4x1xi32>
    %10 = vector.broadcast %9 : vector<8x4x1xi32> to vector<8x4x128xi32>
    %11 = vector.broadcast %6 : vector<1x1x128xi32> to vector<8x4x128xi32>
    %12 = arith.cmpi eq, %10, %11 : vector<8x4x128xi32>
    %13 = arith.extui %12 : vector<8x4x128xi1> to vector<8x4x128xi32>
    %14 = arith.sitofp %13 : vector<8x4x128xi32> to vector<8x4x128xf32>
    %cst_2 = arith.constant dense<0.000000e+00> : vector<8x128xf32>
    %15 = vector.multi_reduction <add>, %14, %cst_2 [1] : vector<8x4x128xf32> to vector<8x128xf32>
    %16 = arith.addf %7, %15 : vector<8x128xf32>
    %c0_3 = arith.constant 0 : index
    %c4 = arith.constant 4 : index
    %17 = vector.load %arg2[%c0_3, %c4] : memref<8x8xi32, #tpu.memory_space<vmem>>, vector<8x4xi32>
    %18 = vector.shape_cast %17 : vector<8x4xi32> to vector<8x4x1xi32>
    %19 = vector.broadcast %18 : vector<8x4x1xi32> to vector<8x4x128xi32>
    %20 = vector.broadcast %6 : vector<1x1x128xi32> to vector<8x4x128xi32>
    %21 = arith.cmpi eq, %19, %20 : vector<8x4x128xi32>
    %22 = arith.extui %21 : vector<8x4x128xi1> to vector<8x4x128xi32>
    %23 = arith.sitofp %22 : vector<8x4x128xi32> to vector<8x4x128xf32>
    %cst_4 = arith.constant dense<0.000000e+00> : vector<8x128xf32>
    %24 = vector.multi_reduction <add>, %23, %cst_4 [1] : vector<8x4x128xf32> to vector<8x128xf32>
    %25 = arith.addf %16, %24 : vector<8x128xf32>
    %c0_5 = arith.constant 0 : index
    %c0_6 = arith.constant 0 : index
    %26 = vector.load %arg9[%c0_5, %c0_6] : memref<8x128xf32, #tpu.memory_space<vmem>>, vector<8x128xf32>
    %c0_7 = arith.constant 0 : index
    %c0_8 = arith.constant 0 : index
    %27 = vector.load %arg3[%c0_7, %c0_8] : memref<128x128xf32, #tpu.memory_space<vmem>>, vector<128x128xf32>
    %cst_9 = arith.constant dense<0.000000e+00> : vector<8x128xf32>
    %28 = tpu.matmul %25, %27, %cst_9 {dimension_numbers = #tpu.dot_dimension_numbers<[1], [0], [0], [1], [0, 0, 1, 1], [], []>} : vector<8x128xf32>, vector<128x128xf32>, vector<8x128xf32> -> vector<8x128xf32>
    %29 = arith.addf %26, %28 : vector<8x128xf32>
    %c0_10 = arith.constant 0 : index
    %c0_11 = arith.constant 0 : index
    %30 = vector.load %arg9[%c0_10, %c0_11] : memref<8x128xf32, #tpu.memory_space<vmem>>, vector<8x128xf32>
    tpu.vector_store %arg9[%c0_10, %c0_11], %29 {strides = array<i32>} : memref<8x128xf32, #tpu.memory_space<vmem>>, vector<8x128xf32>,
    %c2_i32 = arith.constant 2 : i32
    %31 = arith.cmpi eq, %arg1, %c2_i32 : i32
    %32 = arith.extui %31 : i1 to i32
    %c0_i32_12 = arith.constant 0 : i32
    %33 = arith.cmpi ne, %32, %c0_i32_12 : i32
    scf.if %33 {
      %c0_13 = arith.constant 0 : index
      %c0_14 = arith.constant 0 : index
      %34 = vector.load %arg2[%c0_13, %c0_14] : memref<8x8xi32, #tpu.memory_space<vmem>>, vector<8x8xi32>
      %c0_i32_15 = arith.constant 0 : i32
      %35 = vector.broadcast %c0_i32_15 : i32 to vector<8x8xi32>
      %36 = arith.cmpi sgt, %34, %35 : vector<8x8xi32>
      %37 = arith.extui %36 : vector<8x8xi1> to vector<8x8xi32>
      %38 = arith.sitofp %37 : vector<8x8xi32> to vector<8x8xf32>
      %cst_16 = arith.constant dense<0.000000e+00> : vector<8xf32>
      %39 = vector.multi_reduction <add>, %38, %cst_16 [1] : vector<8x8xf32> to vector<8xf32>
      %40 = vector.shape_cast %39 : vector<8xf32> to vector<8x1xf32>
      %cst_17 = arith.constant 9.99999971E-10 : f32
      %41 = vector.broadcast %cst_17 : f32 to vector<8x1xf32>
      %42 = arith.addf %40, %41 : vector<8x1xf32>
      %c0_18 = arith.constant 0 : index
      %c0_19 = arith.constant 0 : index
      %43 = vector.load %arg9[%c0_18, %c0_19] : memref<8x128xf32, #tpu.memory_space<vmem>>, vector<8x128xf32>
      %44 = vector.broadcast %42 : vector<8x1xf32> to vector<8x128xf32>
      %45 = arith.divf %43, %44 : vector<8x128xf32>
      %c0_20 = arith.constant 0 : index
      %c0_21 = arith.constant 0 : index
      %46 = vector.load %arg4[%c0_20, %c0_21] : memref<128x128xf32, #tpu.memory_space<vmem>>, vector<128x128xf32>
      %cst_22 = arith.constant dense<0.000000e+00> : vector<8x128xf32>
      %47 = tpu.matmul %45, %46, %cst_22 {dimension_numbers = #tpu.dot_dimension_numbers<[1], [0], [0], [1], [0, 0, 1, 1], [], []>} : vector<8x128xf32>, vector<128x128xf32>, vector<8x128xf32> -> vector<8x128xf32>
      %c0_23 = arith.constant 0 : index
      %c0_24 = arith.constant 0 : index
      %48 = vector.load %arg5[%c0_23, %c0_24] : memref<1x128xf32, #tpu.memory_space<vmem>>, vector<1x128xf32>
      %49 = vector.broadcast %48 : vector<1x128xf32> to vector<8x128xf32>
      %50 = arith.addf %47, %49 : vector<8x128xf32>
      %cst_25 = arith.constant 0.000000e+00 : f32
      %51 = vector.broadcast %cst_25 : f32 to vector<8x128xf32>
      %52 = arith.maximumf %50, %51 : vector<8x128xf32>
      %c0_26 = arith.constant 0 : index
      %c0_27 = arith.constant 0 : index
      %53 = vector.load %arg6[%c0_26, %c0_27] : memref<128x128xf32, #tpu.memory_space<vmem>>, vector<128x128xf32>
      %cst_28 = arith.constant dense<0.000000e+00> : vector<8x128xf32>
      %54 = tpu.matmul %52, %53, %cst_28 {dimension_numbers = #tpu.dot_dimension_numbers<[1], [0], [0], [1], [0, 0, 1, 1], [], []>} : vector<8x128xf32>, vector<128x128xf32>, vector<8x128xf32> -> vector<8x128xf32>
      %c0_29 = arith.constant 0 : index
      %c0_30 = arith.constant 0 : index
      %55 = vector.load %arg7[%c0_29, %c0_30] : memref<1x128xf32, #tpu.memory_space<vmem>>, vector<1x128xf32>
      %56 = vector.broadcast %55 : vector<1x128xf32> to vector<8x128xf32>
      %57 = arith.addf %54, %56 : vector<8x128xf32>
      %58 = arith.mulf %57, %57 : vector<8x128xf32>
      %cst_31 = arith.constant dense<0.000000e+00> : vector<8xf32>
      %59 = vector.multi_reduction <add>, %58, %cst_31 [1] : vector<8x128xf32> to vector<8xf32>
      %60 = vector.shape_cast %59 : vector<8xf32> to vector<8x1xf32>
      %cst_32 = arith.constant 1.000000e-24 : f32
      %61 = vector.broadcast %cst_32 : f32 to vector<8x1xf32>
      %62 = arith.maximumf %60, %61 : vector<8x1xf32>
      %63 = math.rsqrt %62 : vector<8x1xf32>
      %64 = vector.broadcast %63 : vector<8x1xf32> to vector<8x128xf32>
      %65 = arith.mulf %57, %64 : vector<8x128xf32>
      %c0_33 = arith.constant 0 : index
      %c0_34 = arith.constant 0 : index
      %66 = vector.load %arg8[%c0_33, %c0_34] : memref<8x128xf32, #tpu.memory_space<vmem>>, vector<8x128xf32>
      tpu.vector_store %arg8[%c0_33, %c0_34], %65 {strides = array<i32>} : memref<8x128xf32, #tpu.memory_space<vmem>>, vector<8x128xf32>,
    } else {
    }
    return
  }
  func.func @transform_0(%arg0: i32, %arg1: i32) -> (i32, i32) {
    %c0_i32 = arith.constant 0 : i32
    %c0_i32_0 = arith.constant 0 : i32
    return %arg0, %c0_i32 : i32, i32
  }
  func.func @transform_1(%arg0: i32, %arg1: i32) -> (i32, i32) {
    %c0_i32 = arith.constant 0 : i32
    %c0_i32_0 = arith.constant 0 : i32
    return %arg1, %c0_i32 : i32, i32
  }
  func.func @transform_2(%arg0: i32, %arg1: i32) -> (i32, i32) {
    %c0_i32 = arith.constant 0 : i32
    %c0_i32_0 = arith.constant 0 : i32
    %c0_i32_1 = arith.constant 0 : i32
    return %c0_i32, %c0_i32_0 : i32, i32
  }
  func.func @transform_3(%arg0: i32, %arg1: i32) -> (i32, i32) {
    %c0_i32 = arith.constant 0 : i32
    %c0_i32_0 = arith.constant 0 : i32
    %c0_i32_1 = arith.constant 0 : i32
    return %c0_i32, %c0_i32_0 : i32, i32
  }
  func.func @transform_4(%arg0: i32, %arg1: i32) -> (i32, i32) {
    %c0_i32 = arith.constant 0 : i32
    %c0_i32_0 = arith.constant 0 : i32
    %c0_i32_1 = arith.constant 0 : i32
    return %c0_i32, %c0_i32_0 : i32, i32
  }
  func.func @transform_5(%arg0: i32, %arg1: i32) -> (i32, i32) {
    %c0_i32 = arith.constant 0 : i32
    %c0_i32_0 = arith.constant 0 : i32
    %c0_i32_1 = arith.constant 0 : i32
    return %c0_i32, %c0_i32_0 : i32, i32
  }
  func.func @transform_6(%arg0: i32, %arg1: i32) -> (i32, i32) {
    %c0_i32 = arith.constant 0 : i32
    %c0_i32_0 = arith.constant 0 : i32
    return %arg0, %c0_i32 : i32, i32
  }
}

</mosaic_0001>

<bundles_post_ra>
// kernel: tpu_custom_call.1
= control target key start
LH: loop header
LB: loop body
LE: loop exit
PB: predicated region body
PF: predicated region fallthrough
CT: control target
= control target key end

     0   :  { %s1713_s0 = inlined_call_operand.vmem [shape: s32[16,8], index: 0, kind: input, shape index: {}]   ;;  %s1714_s1 = inlined_call_operand.hbm [shape: f32[384,128], index: 1, kind: input, shape index: {}]   ;;  %s1715_s2 = inlined_call_operand.hbm [shape: f32[128,128], index: 2, kind: input, shape index: {}]   ;;  %s1716_s3 = inlined_call_operand.vmem [shape: f32[1,128], index: 3, kind: input, shape index: {}]   ;;  %s1717_s4 = inlined_call_operand.hbm [shape: f32[128,128], index: 4, kind: input, shape index: {}]   ;;  %s1718_s5 = inlined_call_operand.vmem [shape: f32[1,128], index: 5, kind: input, shape index: {}]   ;;  %s1719_s6 = inlined_call_operand.hbm [shape: f32[16,128], index: 6, kind: output, shape index: {}]  }
   0x1   :  { %1729 = sst [smem:[#allocation18_spill]] %s1715_s2 }
   0x2   :  { %1730 = sst [smem:[#allocation19_spill]] %s1717_s4 }
   0x3   :  { %1731 = sst [smem:[#allocation20_spill]] %s1718_s5 }
   0x4   :  { %1732 = sst [smem:[#allocation21_spill]] %s1719_s6 }
   0x5   :  { %11 = vsyncpa [#allocation4], 0 }
   0x6   :  { %13 = vsyncpa [#allocation4 + $0x1], 0 }
   0x7   :  { %14 = vsyncpa [#allocation7], 0 }
   0x8   :  { %15 = vsyncpa [#allocation5], 0 }
   0x9   :  { %17 = vsyncpa [#allocation5 + $0x1], 0  ;;  %s1387_s21 = smov 0   ;;  %s1389_s22 = smov 0  }
   0xa   :  { %s1391_s23 = smov 0   ;;  %s1393_s24 = smov 0  }
   0xb   :  { %s1395_s25 = smov 0   ;;  %s1397_s26 = smov 0  }
   0xc   :  { %s1399_s27 = smov 0   ;;  %s1401_s28 = smov 0  }
   0xd   :  { %s1403_s29 = smov 0   ;;  %s1405_s30 = smov 0  }
   0xe   :  { %s1407_s7 = smov 0  }
   0xf LB: > { %1733 = sst [smem:[#allocation13_spill]] %s1303_s21  ;;  %s943_s8 = sadd.s32 4294967295, %s1343_s7   ;;  %s1343_s7 = sphi %s1407_s7, %s23_s7   ;;  %s1339_s30 = sphi %s1405_s30, %s1765_s30   ;;  %s1335_s29 = sphi %s1403_s29, %s1764_s29   ;;  %s1331_s28 = sphi %s1401_s28, %s1763_s28   ;;  %s1327_s27 = sphi %s1399_s27, %s1762_s27   ;;  %s1323_s26 = sphi %s1397_s26, %s1761_s26   ;;  %s1319_s25 = sphi %s1395_s25, %s1760_s25   ;;  %s1315_s24 = sphi %s1393_s24, %s1759_s24   ;;  %s1311_s23 = sphi %s1391_s23, %s1758_s23   ;;  %s1307_s22 = sphi %s1389_s22, %s1757_s22   ;;  %s1303_s21 = sphi %s1387_s21, %s1756_s21  }
  0x10   : > { %s944_s9 = sadd.s32 4294967294, %s1343_s7   ;;  %p81_p0 = scmp.ne.s32.totalorder %s1319_s25, %s1315_s24 }
  0x11   : > { %p1443_p1 = scmp.eq.s32.totalorder %s943_s8, 0  ;;  %p188_p2 = scmp.ne.s32.totalorder %s1311_s23, %s1307_s22 }
  0x12   : > { %p189_p4 = scmp.eq.s32.totalorder %s943_s8, 5  ;;  %p194_p5 = scmp.ne.s32.totalorder %s1307_s22, %s1303_s21 }
  0x13   : > { %p1452_p3 = por %p1443_p1, %p81_p0  ;;  %p195_p6 = scmp.eq.s32.totalorder %s944_s9, 5 }
  0x14   : > { %p1458_p7 = por %p189_p4, %p188_p2  ;;  %p945_p8 = scmp.ge.s32.totalorder %s1343_s7, 1 }
  0x15   : > { %p1463_p9 = por %p195_p6, %p194_p5  ;;  %p202_p10 = scmp.lt.s32.totalorder %s1343_s7, 7 }
  0x16   : > { %s1736_s13 = scalar_select %p1458_p7, 1, 0 }
  0x17   : > { %s1738_s14 = scalar_select %p1463_p9, 1, 0 }
  0x18   : > { %1737 = sst [smem:[#allocation14_spill]] %s1736_s13  ;;  %p1471_p11 = pnand %p945_p8, %p202_p10 }
  0x19   : > { %1739 = sst [smem:[#allocation15_spill]] %s1738_s14  ;;  %s1345_s19 = smov [#allocation6]  }
  0x1a   : > { %s1740_s2 = sld [smem:[#allocation18_spill]]  ;;  %p995_p12 = pneg %p1471_p11 }
  0x1b   : > { %s215_s20 = sshll.u32 %s1345_s19, 4  ;;  %s1742_s4 = sld [smem:[#allocation19_spill]]  ;;  %s216_s20 = int_to_ptr.vmem [resolvable:$true] %s215_s20 }
  0x1c   : > { %p996_p13 = pnand %p995_p12, %p1443_p1  ;;  %s1720_s15 = smov 128  }
  0x1d   : > { %s1721_s16 = smov 8   ;;  %s1348_s19 = smov [#allocation8]  }
  0x1e   : > { %s232_s11 = sshll.u32 %s1348_s19, 4  ;;  %s32_s24 = sadd.s32 1, %s1335_s29  ;;  %s233_s11 = int_to_ptr.vmem [resolvable:$true] %s232_s11 }
  0x1f   : > { %s35_s8 = sadd.s32 1, %s1339_s30  ;;  %p33_p0 = scmp.ge.s32.totalorder %s32_s24, 3 }
  0x20   : > { %s213_s17 = sshll.u32 %s1740_s2, 4  ;;  %s68_s2 = sadd.s32 1, %s1323_s26  ;;  %s214_s17 = int_to_ptr.hbm [resolvable:$true] %s213_s17 }
  0x21   : > { %s230_s9 = sshll.u32 %s1742_s4, 4  ;;  %p75_p2 = scmp.ne.s32.totalorder %s1323_s26, %s1319_s25  ;;  %s231_s9 = int_to_ptr.hbm [resolvable:$true] %s230_s9 }
  0x22   : > { %998 = dma.hbm_to_vmem [thread:$0]  (!%p996_p13), %s214_s17, 2048, %s216_s20, [#allocation7], %s1720_s15, %s1720_s15, %s1721_s16  }
  0x23   : > { %1001 = dma.hbm_to_vmem [thread:$0]  (!%p996_p13), %s231_s9, 2048, %s233_s11, [#allocation7], %s1720_s15, %s1720_s15, %s1721_s16  }
  0x24   : > { %p76_p4 = scmp.eq.s32.totalorder %s1343_s7, 0  ;;  %s1767_s24 = smov (%p33_p0, %s32_s24), 0 }
  0x25   : > { %1743 = sst [smem:[#allocation16_spill]] %s1767_s24  ;;  %s1769_s8 = smov (!%p33_p0, %s35_s8), %s1339_s30 }
  0x26   : > { %s65_s17 = ssub.s32 %s1335_s29, %s1767_s24  ;;  %p1499_p5 = por %p76_p4, %p75_p2 }
  0x27   : > { %p37_p6 = scmp.ge.s32.totalorder %s1769_s8, 2  ;;  %p66_p8 = scmp.eq.s32.totalorder %s65_s17, 0 }
  0x28   : > { %p1012_p10 = scmp.lt.s32.totalorder %s1343_s7, 6  ;;  %s256_s11 = sand.u32 1, %s1323_s26  }
  0x29   : > { %s1771_s8 = smov (%p37_p6, %s1769_s8), 0  ;;  %s949_s15 = sshll.u32 %s256_s11, 7 }
  0x2a   : > { %1745 = sst [smem:[#allocation17_spill]] %s1771_s8  ;;  %s175_s19 = ssub.s32 %s1339_s30, %s1771_s8 }
  0x2b   : > { %s1508_s9 = scalar_select %p66_p8, %s1323_s26, %s68_s2  }
  0x2c   : > { %p176_p12 = scmp.eq.s32.totalorder %s175_s19, 0  ;;  %s982_s16 = sshll.u32 %s1335_s29, 7 }
  0x2d   : > { %s1746_s4 = sadd.s32 1, %s1311_s23  ;;  %s265_s17 = scalar_lea.hbm %s1714_s1, %s982_s16 }
  0x2e   : > { %s1516_s24 = scalar_select %p176_p12, %s1311_s23, %s1746_s4  }
  0x2f   : > { %s260_s6 = scalar_lea.vmem [#allocation3], %s949_s15  ;;  %s266_s5 = sshll.u32 %s265_s17, 4  ;;  %s267_s5 = int_to_ptr.hbm [resolvable:$true] %s266_s5 }
  0x30   : > { %s268_s13 = sshll.u32 %s260_s6, 4  ;;  %p1003_p13 = pnand %p1012_p10, %p1499_p5  ;;  %s269_s13 = int_to_ptr.vmem [resolvable:$true] %s268_s13 }
  0x31   : > { %s257_s2 = scalar_lea.sflag [#allocation4], %s256_s11  ;;  %s1747_s8 = smov 8  }
  0x32   : > { %s1748_s19 = smov 128   ;;  %280 = sbr.rel (%p1471_p11) target bundleno = 960 (0x3c0), region = 44 }
  0x33   : > { %1005 = dma.hbm_to_vmem [thread:$0]  (!%p1003_p13), %s267_s5, 2048, %s269_s13, %s257_s2, %s1748_s19, %s1748_s19, %s1747_s8  }
  0x34   : > { %s282_s4 = sand.u32 (!%p1471_p11), 1, %s1319_s25  }
  0x35   : > { %s953_s21 = sshll.u32 (!%p1471_p11), %s282_s4, 7  ;;  %s283_s14 = scalar_lea.sflag (!%p1471_p11), [#allocation4], %s282_s4 }
  0x36   : > { %s1531_s6 = scalar_lea.vmem (!%p1471_p11), [#allocation3], %s953_s21 }
  0x37   : > { %1290 = dma.done.wait (%p1452_p3), %s283_s14, 2048  }
  0x38   : > { %1292 = vsyncadd (%p1452_p3), %s283_s14, 4294965248 }
  0x39   : > { %1294 = dma.done.wait (%p1443_p1), [#allocation7], 4096  }
  0x3a   : > { %1296 = vsyncadd (%p1443_p1), [#allocation7], 4294963200  ;;  %s327_s5 = sand.u32 1, %s1307_s22   ;;  %p330_p11 = scmp.lt.s32.totalorder %s1331_s28, 1 }
  0x3b   : > { %s1545_s13 = sshll.u32 %s327_s5, 3  ;;  %p958_p1 = scmp.ne.s32.totalorder %s1327_s27, 0 }
  0x3c   : > { %s331_s18 = scalar_select %p330_p11, %s1331_s28, 1 }
  0x3d   : > { %s329_s20 = scalar_lea.vmem [#allocation9], %s1545_s13  ;;  %338 = sbr.rel (%p958_p1) target bundleno = 68 (0x44), region = 60 }
  0x3e   : > { %s957_s15 = sshll.u32 %s331_s18, 3 }
  0x3f   : > { %s1551_s8 = scalar_lea.vmem %s1713_s0, %s957_s15 }
  0x42   : > { %v1349_v0 = vmov 0.0  }
  0x43   : > { %339 = vst [vmem:[#allocation2] sm:$0xff] %v1349_v0 }
  0x44 PF: > { %v341_v1 = vlaneseq  ;;  %v345_v4 = vld [vmem:[%s1551_s8] sm:$0xff]  ;;  %s959_s10 = sshll.u32 %s1327_s27, 7  ;;  %v642_v20 = vld [vmem:[%s1531_s6 + $0x70] sm:$0xff]  ;;  %v641_v24 = vld [vmem:[%s1531_s6 + $0x68] sm:$0xff]  ;;  %vm426_vm2 = vcmask 1043456   ;;  %v1350_v29 = vmov 0.0  }
  0x45   : > { %v360_v5 = vperm.slane %v345_v4, 2  ;;  %v374_v6 = vperm.slane %v345_v4, 4  ;;  %v346_v7 = vperm.slane %v345_v4, 0  ;;  %v353_v8 = vperm.slane %v345_v4, 1  ;;  %v643_v18 = vld [vmem:[%s1531_s6 + $0x78] sm:$0xff]  ;;  %v640_v26 = vld [vmem:[%s1531_s6 + $0x60] sm:$0xff] }
  0x46   : > { %v348_v2 = vshrl.u32 %v341_v1, 7  ;;  %v367_v9 = vperm.slane %v345_v4, 3  ;;  %v381_v10 = vperm.slane %v345_v4, 5  ;;  %v395_v11 = vperm.slane %v345_v4, 7  ;;  %667 = vmatpush.msra.mxu0 %v643_v18  ;;  %v639_v27 = vld [vmem:[%s1531_s6 + $0x58] sm:$0xff]  ;;  %v638_v28 = vld [vmem:[%s1531_s6 + $0x50] sm:$0xff] }
  0x47   : > { %v388_v12 = vperm.slane %v345_v4, 6  ;;  %v342_v17 = vand.u32 127, %v341_v1  ;;  %v343_v19 = vstv %s959_s10  ;;  %v637_v31 = vld [vmem:[%s1531_s6 + $0x48] sm:$0xff]  ;;  %v636_v37 = vld [vmem:[%s1531_s6 + $0x40] sm:$0xff]  ;;  %v635_v40 = vld [vmem:[%s1531_s6 + $0x38] sm:$0xff]  ;;  %p976_p3 = scmp.ne.s32.totalorder %s1327_s27, 2 }
  0x48   : > { %v493_v3 = vadd.s32 4, %v348_v2  ;;  %1111 = vset.pattern.permute.xlu2 %v348_v2  ;;  %668 = vmatpush.msra.mxu0 %v642_v20  ;;  %v634_v44 = vld [vmem:[%s1531_s6 + $0x30] sm:$0xff]  ;;  %v633_v48 = vld [vmem:[%s1531_s6 + $0x28] sm:$0xff]  ;;  %v632_v57 = vld [vmem:[%s1531_s6 + $0x20] sm:$0xff]  ;;  %s1749_s19 = sld [smem:[#allocation20_spill]] (!%p976_p3) }
  0x49   : > { %v1561_v22 = vadd.s32 %v343_v19, %v342_v17  ;;  %v631_v1 = vld [vmem:[%s1531_s6 + $0x18] sm:$0xff]  ;;  %v630_v4 = vld [vmem:[%s1531_s6 + $0x10] sm:$0xff]  ;;  %v628_v17 = vld [vmem:[%s1531_s6] sm:$0xff] }
  0x4a   : > { %1115 = vset.pattern.permute.xlu0 %v493_v3  ;;  %1112 = vset.pattern.permute.xlu1 %v493_v3 }
  0x4b   : > { %669 = vmatpush.msra.mxu0 %v641_v24 }
  0x4d   : > { %670 = vmatpush.msra.mxu0 %v640_v26 }
  0x4f   : > { %671 = vmatpush.msra.mxu0 %v639_v27 }
  0x50   : > { %365 = vperm.xlu2 %1111, %v360_v5  }
  0x51   : > { %672 = vmatpush.msra.mxu0 %v638_v28 }
  0x52   : > { %519 = vperm.xlu0 %1115, %v374_v6   ;;  %495 = vperm.xlu1 %1112, %v346_v7  }
  0x53   : > { %673 = vmatpush.msra.mxu0 %v637_v31 }
  0x55   : > { %674 = vmatpush.msra.mxu0 %v636_v37 }
  0x57   : > { %675 = vmatpush.msra.mxu0 %v635_v40 }
  0x58   : > { %1113 = vset.pattern.permute.xlu2 %v493_v3 }
  0x59   : > { %676 = vmatpush.msra.mxu0 %v634_v44 }
  0x5a   : > { %1116 = vset.pattern.permute.xlu0 %v348_v2  ;;  %501 = vperm.xlu1 %1112, %v353_v8  }
  0x5b   : > { %677 = vmatpush.msra.mxu0 %v633_v48 }
  0x5d   : > { %678 = vmatpush.msra.mxu0 %v632_v57 }
  0x5f   : > { %679 = vmatpush.msra.mxu0 %v631_v1 }
  0x60   : > { %507 = vperm.xlu2 %1113, %v360_v5  }
  0x61   : > { %680 = vmatpush.msra.mxu0 %v630_v4 }
  0x62   : > { %351 = vperm.xlu0 %1116, %v346_v7   ;;  %513 = vperm.xlu1 %1112, %v367_v9  }
  0x68   : > { %1114 = vset.pattern.permute.xlu2 %v348_v2 }
  0x6a   : > { %358 = vperm.xlu0 %1116, %v353_v8   ;;  %1117 = vset.pattern.permute.xlu1 %v348_v2  ;;  %v629_v8 = vld [vmem:[%s1531_s6 + $0x8] sm:$0xff] }
  0x6b   : > { %681 = vmatpush.msra.mxu0 %v629_v8 }
  0x6d   : > { %682 = vmatpush.msra.mxu0 %v628_v17 }
  0x70   : > { %379 = vperm.xlu2 %1114, %v374_v6  }
  0x72   : > { %372 = vperm.xlu0 %1116, %v367_v9   ;;  %386 = vperm.xlu1 %1117, %v381_v10  }
  0x78   : > { %1118 = vset.pattern.permute.xlu2 %v493_v3 }
  0x7a   : > { %400 = vperm.xlu0 %1116, %v395_v11   ;;  %393 = vperm.xlu1 %1117, %v388_v12  }
  0x80   : > { %525 = vperm.xlu2 %1118, %v381_v10  }
  0x82   : > { %1119 = vset.pattern.permute.xlu1 %v493_v3  ;;  %1120 = vset.pattern.permute.xlu0 %v493_v3 }
  0x88   : > { %531 = vperm.xlu2 %1118, %v388_v12  }
  0x8a   : > { %537 = vperm.xlu1 %1119, %v395_v11  }
  0xaa   : > { %v366_v13 = vpop.permute.xlu2 %365 }
  0xab   : > { %vm404_vm0 = vcmp.eq.s32.totalorder %v366_v13, %v1561_v22 }
  0xac   : > { %v962_v30 = vsel %vm404_vm0, 1.0, %v1350_v29  ;;  %vm652_vm0 = vcmask 1041409  }
  0xad   : > { %v441_v36 = vsel %vm426_vm2, %v962_v30, 0.0 }
  0xae   : > { %v442_v41 = vrot.slane %v441_v36, 4 }
  0xb0   : > { %v1594_v49 = vadd.f32 %v442_v41, %v441_v36 }
  0xb2   : > { %v444_v9 = vrot.slane %v1594_v49, 2 }
  0xb4   : > { %v445_v40 = vadd.f32 %v444_v9, %v1594_v49 }
  0xba   : > { %v508_v16 = vpop.permute.xlu2 %507 }
  0xbb   : > { %vm541_vm1 = vcmp.eq.s32.totalorder %v508_v16, %v1561_v22 }
  0xbc   : > { %v970_v33 = vsel %vm541_vm1, 1.0, %v1350_v29 }
  0xbd   : > { %v577_v38 = vsel %vm426_vm2, %v970_v33, 0.0 }
  0xbe   : > { %v578_v45 = vrot.slane %v577_v38, 4 }
  0xc0   : > { %v579_v58 = vadd.f32 %v578_v45, %v577_v38 }
  0xc2   : > { %v580_v10 = vrot.slane %v579_v58, 2 }
  0xc4   : > { %v496_v14 = vpop.permute.xlu1 %495  ;;  %v1556_v15 = vpop.permute.xlu0 %519  ;;  %v581_v44 = vadd.f32 %v580_v10, %v579_v58 }
  0xc5   : > { %vm539_vm6 = vcmp.eq.s32.totalorder %v496_v14, %v1561_v22  ;;  %vm543_vm7 = vcmp.eq.s32.totalorder %v1556_v15, %v1561_v22 }
  0xc6   : > { %v968_v46 = vsel %vm539_vm6, 1.0, %v1350_v29  ;;  %v972_v59 = vsel %vm543_vm7, 1.0, %v1350_v29  ;;  %v582_v49 = vrot.slane %v581_v44, 1  ;;  %vm662_vm6 = vcmask 1046534  }
  0xc7   : > { %v563_v54 = vsel %vm426_vm2, %v968_v46, 0.0  ;;  %v591_v5 = vsel %vm426_vm2, %v972_v59, 0.0  ;;  %vm664_vm7 = vcmask 1047559  }
  0xc8   : > { %v564_v2 = vrot.slane %v563_v54, 4  ;;  %v592_v19 = vrot.slane %v591_v5, 4  ;;  %v583_v10 = vadd.f32 %v582_v49, %v581_v44 }
  0xca   : > { %v1563_v23 = vpop.permute.xlu2 %379  ;;  %v565_v18 = vadd.f32 %v564_v2, %v563_v54  ;;  %v593_v45 = vadd.f32 %v592_v19, %v591_v5 }
  0xcb   : > { %vm406_vm9 = vcmp.eq.s32.totalorder %v1563_v23, %v1561_v22 }
  0xcc   : > { %v502_v21 = vpop.permute.xlu1 %501  ;;  %v964_v3 = vsel %vm406_vm9, 1.0, %v1350_v29  ;;  %v566_v36 = vrot.slane %v565_v18, 2  ;;  %v594_v58 = vrot.slane %v593_v45, 2 }
  0xcd   : > { %vm540_vm4 = vcmp.eq.s32.totalorder %v502_v21, %v1561_v22  ;;  %v455_v14 = vsel %vm426_vm2, %v964_v3, 0.0 }
  0xce   : > { %v969_v42 = vsel %vm540_vm4, 1.0, %v1350_v29  ;;  %v456_v27 = vrot.slane %v455_v14, 4  ;;  %vm656_vm4 = vcmask 1043459  }
  0xcf   : > { %v570_v50 = vsel %vm426_vm2, %v969_v42, 0.0 }
  0xd0   : > { %v571_v62 = vrot.slane %v570_v50, 4 }
  0xd2   : > { %v572_v13 = vadd.f32 %v571_v62, %v570_v50  ;;  %v457_v50 = vadd.f32 %v456_v27, %v455_v14  ;;  %v595_v14 = vadd.f32 %v594_v58, %v593_v45 }
  0xd4   : > { %v352_v25 = vpop.permute.xlu0 %351  ;;  %v514_v34 = vpop.permute.xlu1 %513  ;;  %v458_v1 = vrot.slane %v457_v50, 2 }
  0xd5   : > { %vm402_vm5 = vcmp.eq.s32.totalorder %v352_v25, %v1561_v22  ;;  %vm542_vm8 = vcmp.eq.s32.totalorder %v514_v34, %v1561_v22 }
  0xd6   : > { %v960_v43 = vsel %vm402_vm5, 1.0, %v1350_v29  ;;  %v971_v60 = vsel %vm542_vm8, 1.0, %v1350_v29  ;;  %vm658_vm5 = vcmask 1044484  }
  0xd7   : > { %v427_v51 = vsel %vm426_vm2, %v960_v43, 0.0  ;;  %v584_v6 = vsel %vm426_vm2, %v971_v60, 0.0 }
  0xd8   : > { %v428_v63 = vrot.slane %v427_v51, 4  ;;  %v585_v20 = vrot.slane %v584_v6, 4 }
  0xda   : > { %v1573_v32 = vpop.permute.xlu2 %525  ;;  %v429_v15 = vadd.f32 %v428_v63, %v427_v51  ;;  %v586_v37 = vadd.f32 %v585_v20, %v584_v6 }
  0xdb   : > { %vm544_vm11 = vcmp.eq.s32.totalorder %v1573_v32, %v1561_v22  ;;  %v573_v32 = vrot.slane %v572_v13, 2 }
  0xdc   : > { %v359_v35 = vpop.permute.xlu0 %358  ;;  %v973_v12 = vsel %vm544_vm11, 1.0, %v1350_v29  ;;  %v430_v33 = vrot.slane %v429_v15, 2  ;;  %v587_v54 = vrot.slane %v586_v37, 2 }
  0xdd   : > { %vm403_vm3 = vcmp.eq.s32.totalorder %v359_v35, %v1561_v22  ;;  %v598_v26 = vsel %vm426_vm2, %v973_v12, 0.0  ;;  %v574_v48 = vadd.f32 %v573_v32, %v572_v13 }
  0xde   : > { %v961_v39 = vsel %vm403_vm3, 1.0, %v1350_v29  ;;  %v599_v38 = vrot.slane %v598_v26, 4  ;;  %v431_v51 = vadd.f32 %v430_v33, %v429_v15  ;;  %v588_v4 = vadd.f32 %v587_v54, %v586_v37 }
  0xdf   : > { %v434_v47 = vsel %vm426_vm2, %v961_v39, 0.0  ;;  %vm654_vm3 = vcmask 1042434  }
  0xe0   : > { %v435_v55 = vrot.slane %v434_v47, 4  ;;  %v432_v2 = vrot.slane %v431_v51, 1  ;;  %v589_v19 = vrot.slane %v588_v4, 1 }
  0xe2   : > { %v532_v56 = vpop.permute.xlu2 %531  ;;  %v436_v7 = vadd.f32 %v435_v55, %v434_v47  ;;  %v600_v55 = vadd.f32 %v599_v38, %v598_v26  ;;  %v433_v17 = vadd.f32 %v432_v2, %v431_v51  ;;  %v627_v2 = vld [vmem:[#allocation2] sm:$0xff] }
  0xe3   : > { %vm545_vm12 = vcmp.eq.s32.totalorder %v532_v56, %v1561_v22  ;;  %v446_v56 = vrot.slane %v445_v40, 1 }
  0xe4   : > { %v373_v52 = vpop.permute.xlu0 %372  ;;  %v387_v53 = vpop.permute.xlu1 %386  ;;  %v974_v16 = vsel %vm545_vm12, 1.0, %v1350_v29  ;;  %v437_v25 = vrot.slane %v436_v7, 2  ;;  %v601_v5 = vrot.slane %v600_v55, 2 }
  0xe5   : > { %vm405_vm10 = vcmp.eq.s32.totalorder %v373_v52, %v1561_v22  ;;  %vm407_vm13 = vcmp.eq.s32.totalorder %v387_v53, %v1561_v22  ;;  %v605_v30 = vsel %vm426_vm2, %v974_v16, 0.0  ;;  %v567_v53 = vadd.f32 %v566_v36, %v565_v18 }
  0xe6   : > { %v963_v61 = vsel %vm405_vm10, 1.0, %v1350_v29  ;;  %v965_v21 = vsel %vm407_vm13, 1.0, %v1350_v29  ;;  %v438_v41 = vadd.f32 %v437_v25, %v436_v7  ;;  %v606_v42 = vrot.slane %v605_v30, 4 }
  0xe7   : > { %v448_v0 = vsel %vm426_vm2, %v963_v61, 0.0  ;;  %v462_v34 = vsel %vm426_vm2, %v965_v21, 0.0  ;;  %v568_v3 = vrot.slane %v567_v53, 1  ;;  %v447_v6 = vadd.f32 %v446_v56, %v445_v40 }
  0xe8   : > { %v449_v11 = vrot.slane %v448_v0, 4  ;;  %v463_v47 = vrot.slane %v462_v34, 4  ;;  %v439_v57 = vrot.slane %v438_v41, 1  ;;  %v607_v59 = vadd.f32 %v606_v42, %v605_v30 }
  0xe9   : > { %v459_v16 = vadd.f32 %v458_v1, %v457_v50  ;;  %v569_v18 = vadd.f32 %v568_v3, %v567_v53  ;;  %v602_v20 = vadd.f32 %v601_v5, %v600_v55  ;;  %v621_v44 = vadd.f32 %v583_v10, %v447_v6 }
  0xea   : > { %v450_v28 = vadd.f32 %v449_v11, %v448_v0  ;;  %v464_v62 = vadd.f32 %v463_v47, %v462_v34  ;;  %v575_v0 = vrot.slane %v574_v48, 1  ;;  %v440_v7 = vadd.f32 %v439_v57, %v438_v41 }
  0xeb   : > { %v608_v8 = vrot.slane %v607_v59, 2  ;;  %v460_v32 = vrot.slane %v459_v16, 1  ;;  %v619_v33 = vadd.f32 %v569_v18, %v433_v17  ;;  %v603_v37 = vrot.slane %v602_v20, 1 }
  0xec   : > { %v401_v23 = vpop.permute.xlu0 %400  ;;  %v394_v24 = vpop.permute.xlu1 %393  ;;  %v451_v46 = vrot.slane %v450_v28, 2  ;;  %v465_v12 = vrot.slane %v464_v62, 2  ;;  %v576_v15 = vadd.f32 %v575_v0, %v574_v48 }
  0xed   : > { %vm409_vm14 = vcmp.eq.s32.totalorder %v401_v23, %v1561_v22  ;;  %vm408_vm15 = vcmp.eq.s32.totalorder %v394_v24, %v1561_v22  ;;  %v609_v24 = vadd.f32 %v608_v8, %v607_v59  ;;  %v604_v47 = vadd.f32 %v603_v37, %v602_v20 }
  0xee   : > { %v966_v31 = vsel %vm408_vm15, 1.0, %v1350_v29  ;;  %v967_v39 = vsel %vm409_vm14, 1.0, %v1350_v29  ;;  %v452_v61 = vadd.f32 %v451_v46, %v450_v28  ;;  %v620_v23 = vadd.f32 %v576_v15, %v440_v7 }
  0xef   : > { %v469_v35 = vsel %vm426_vm2, %v966_v31, 0.0  ;;  %v476_v52 = vsel %vm426_vm2, %v967_v39, 0.0  ;;  %v466_v27 = vadd.f32 %v465_v12, %v464_v62  ;;  %v596_v31 = vrot.slane %v595_v14, 1 }
  0xf0   : > { %v470_v43 = vrot.slane %v469_v35, 4  ;;  %v477_v63 = vrot.slane %v476_v52, 4  ;;  %v453_v11 = vrot.slane %v452_v61, 1  ;;  %v610_v38 = vrot.slane %v609_v24, 1 }
  0xf1   : > { %v653_v40 = vsel %vm652_vm0, %v620_v23, %v619_v33  ;;  %v597_v45 = vadd.f32 %v596_v31, %v595_v14 }
  0xf2   : > { %v471_v60 = vadd.f32 %v470_v43, %v469_v35  ;;  %v478_v13 = vadd.f32 %v477_v63, %v476_v52  ;;  %v454_v26 = vadd.f32 %v453_v11, %v452_v61  ;;  %v590_v35 = vadd.f32 %v589_v19, %v588_v4 }
  0xf3   : > { %v611_v48 = vadd.f32 %v610_v38, %v609_v24  ;;  %v655_v51 = vsel %vm654_vm3, %v621_v44, %v653_v40 }
  0xf4   : > { %v472_v9 = vrot.slane %v471_v60, 2  ;;  %v479_v28 = vrot.slane %v478_v13, 2  ;;  %v622_v41 = vadd.f32 %v590_v35, %v454_v26 }
  0xf6   : > { %v473_v25 = vadd.f32 %v472_v9, %v471_v60  ;;  %v480_v42 = vadd.f32 %v479_v28, %v478_v13  ;;  %v657_v55 = vsel %vm656_vm4, %v622_v41, %v655_v51 }
  0xf8   : > { %v474_v39 = vrot.slane %v473_v25, 1  ;;  %v481_v53 = vrot.slane %v480_v42, 1 }
  0xfa   : > { %v475_v50 = vadd.f32 %v474_v39, %v473_v25  ;;  %v482_v49 = vadd.f32 %v481_v53, %v480_v42 }
  0xfc   : > { %v538_v21 = vpop.permute.xlu1 %537  ;;  %v625_v59 = vadd.f32 %v611_v48, %v475_v50 }
  0xfd   : > { %vm546_vm1 = vcmp.eq.s32.totalorder %v538_v21, %v1561_v22  ;;  %v467_v22 = vrot.slane %v466_v27, 1 }
  0xfe   : > { %v975_v30 = vsel %vm546_vm1, 1.0, %v1350_v29  ;;  %v461_v29 = vadd.f32 %v460_v32, %v459_v16 }
  0xff   : > { %v612_v34 = vsel %vm426_vm2, %v975_v30, 0.0  ;;  %v468_v52 = vadd.f32 %v467_v22, %v466_v27  ;;  %vm660_vm2 = vcmask 1045509  }
 0x100   : > { %v613_v36 = vrot.slane %v612_v34, 4  ;;  %v623_v56 = vadd.f32 %v597_v45, %v461_v29 }
 0x101   : > { %v624_v62 = vadd.f32 %v604_v47, %v468_v52 }
 0x102   : > { %v614_v43 = vadd.f32 %v613_v36, %v612_v34  ;;  %v659_v60 = vsel %vm658_vm5, %v623_v56, %v657_v55 }
 0x103   : > { %v661_v58 = vsel %vm660_vm2, %v624_v62, %v659_v60 }
 0x104   : > { %v615_v46 = vrot.slane %v614_v43, 2  ;;  %v663_v0 = vsel %vm662_vm6, %v625_v59, %v661_v58 }
 0x106   : > { %v616_v54 = vadd.f32 %v615_v46, %v614_v43 }
 0x108   : > { %v617_v57 = vrot.slane %v616_v54, 1 }
 0x10a   : > { %v618_v61 = vadd.f32 %v617_v57, %v616_v54 }
 0x10c   : > { %v626_v63 = vadd.f32 %v618_v61, %v482_v49 }
 0x10e   : > { %v665_v1 = vsel %vm664_vm7, %v626_v63, %v663_v0 }
 0x10f   : > { %683 = vmatmul.f32.vlgmr.msra.gmra.mxu0 %v665_v1 }
 0x18b   : > { %692 = sbr.rel (%p976_p3) target bundleno = 940 (0x3ac), region = 64 }
 0x18c   : > { %v684_v3 = vpop.f32.mrf.mxu0 }
 0x18d   : > { %v687_v4 = vadd.f32 %v684_v3, %v627_v2 }
 0x18f   : > { %688 = vst [vmem:[#allocation2] sm:$0xff] %v687_v4 }
 0x190   : > { %v693_v5 = vld [vmem:[%s1551_s8] sm:$0xff]  ;;  %vm697_vm8 = vcmask 64512   ;;  %v732_v7 = vld [vmem:[#allocation6 + $0x70] sm:$0xff]  ;;  %v1351_v8 = vmov 0.0   ;;  %v731_v10 = vld [vmem:[#allocation6 + $0x68] sm:$0xff] }
 0x191   : > { %v733_v6 = vld [vmem:[#allocation6 + $0x78] sm:$0xff]  ;;  %vm694_vm9 = vcmp.gt.s32.totalorder %v693_v5, 0  ;;  %v730_v12 = vld [vmem:[#allocation6 + $0x60] sm:$0xff]  ;;  %v728_v14 = vld [vmem:[#allocation6 + $0x50] sm:$0xff] }
 0x192   : > { %738 = vmatpush.msra.mxu0 %v733_v6  ;;  %v977_v9 = vsel %vm694_vm9, 1.0, %v1351_v8  ;;  %v729_v13 = vld [vmem:[#allocation6 + $0x58] sm:$0xff]  ;;  %v727_v15 = vld [vmem:[#allocation6 + $0x48] sm:$0xff]  ;;  %v726_v16 = vld [vmem:[#allocation6 + $0x40] sm:$0xff] }
 0x193   : > { %v698_v11 = vsel %vm697_vm8, %v977_v9, 0.0  ;;  %v725_v17 = vld [vmem:[#allocation6 + $0x38] sm:$0xff]  ;;  %v724_v18 = vld [vmem:[#allocation6 + $0x30] sm:$0xff]  ;;  %v723_v19 = vld [vmem:[#allocation6 + $0x28] sm:$0xff] }
 0x194   : > { %739 = vmatpush.msra.mxu0 %v732_v7  ;;  %699 = vadd.xlane.f32.xlu0 %v698_v11  ;;  %v722_v20 = vld [vmem:[#allocation6 + $0x20] sm:$0xff]  ;;  %v721_v21 = vld [vmem:[#allocation6 + $0x18] sm:$0xff]  ;;  %v720_v23 = vld [vmem:[#allocation6 + $0x10] sm:$0xff] }
 0x195   : > { %v719_v24 = vld [vmem:[#allocation6 + $0x8] sm:$0xff]  ;;  %v718_v25 = vld [vmem:[#allocation6] sm:$0xff]  ;;  %v774_v26 = vld [vmem:[#allocation8 + $0x78] sm:$0xff] }
 0x196   : > { %740 = vmatpush.msra.mxu0 %v731_v10  ;;  %v773_v27 = vld [vmem:[#allocation8 + $0x70] sm:$0xff]  ;;  %779 = vmatpush.msra.mxu1 %v774_v26  ;;  %v772_v28 = vld [vmem:[#allocation8 + $0x68] sm:$0xff]  ;;  %v771_v30 = vld [vmem:[#allocation8 + $0x60] sm:$0xff] }
 0x197   : > { %v770_v31 = vld [vmem:[#allocation8 + $0x58] sm:$0xff]  ;;  %v769_v32 = vld [vmem:[#allocation8 + $0x50] sm:$0xff]  ;;  %v768_v34 = vld [vmem:[#allocation8 + $0x48] sm:$0xff] }
 0x198   : > { %741 = vmatpush.msra.mxu0 %v730_v12  ;;  %780 = vmatpush.msra.mxu1 %v773_v27  ;;  %v767_v36 = vld [vmem:[#allocation8 + $0x40] sm:$0xff]  ;;  %v766_v37 = vld [vmem:[#allocation8 + $0x38] sm:$0xff]  ;;  %v765_v38 = vld [vmem:[#allocation8 + $0x30] sm:$0xff] }
 0x199   : > { %v764_v39 = vld [vmem:[#allocation8 + $0x28] sm:$0xff]  ;;  %v763_v22 = vld [vmem:[#allocation8 + $0x20] sm:$0xff]  ;;  %v762_v43 = vld [vmem:[#allocation8 + $0x18] sm:$0xff] }
 0x19a   : > { %742 = vmatpush.msra.mxu0 %v729_v13  ;;  %781 = vmatpush.msra.mxu1 %v772_v28  ;;  %v702_v47 = vld [vmem:[#allocation2] sm:$0xff]  ;;  %v761_v53 = vld [vmem:[#allocation8 + $0x10] sm:$0xff]  ;;  %v760_v54 = vld [vmem:[#allocation8 + $0x8] sm:$0xff] }
 0x19b   : > { %v759_v55 = vld [vmem:[#allocation8] sm:$0xff]  ;;  %v1121_v56 = vld [vmem:[%s1716_s3] ss:$0 sm:$0xff] }
 0x19c   : > { %743 = vmatpush.msra.mxu0 %v728_v14  ;;  %782 = vmatpush.msra.mxu1 %v771_v30  ;;  %v1122_v49 = vld [vmem:[%s1749_s19] ss:$0 sm:$0xff] }
 0x19e   : > { %744 = vmatpush.msra.mxu0 %v727_v15  ;;  %783 = vmatpush.msra.mxu1 %v770_v31 }
 0x1a0   : > { %745 = vmatpush.msra.mxu0 %v726_v16  ;;  %784 = vmatpush.msra.mxu1 %v769_v32 }
 0x1a2   : > { %746 = vmatpush.msra.mxu0 %v725_v17  ;;  %785 = vmatpush.msra.mxu1 %v768_v34 }
 0x1a4   : > { %747 = vmatpush.msra.mxu0 %v724_v18  ;;  %786 = vmatpush.msra.mxu1 %v767_v36 }
 0x1a6   : > { %748 = vmatpush.msra.mxu0 %v723_v19  ;;  %787 = vmatpush.msra.mxu1 %v766_v37 }
 0x1a8   : > { %749 = vmatpush.msra.mxu0 %v722_v20  ;;  %788 = vmatpush.msra.mxu1 %v765_v38 }
 0x1aa   : > { %750 = vmatpush.msra.mxu0 %v721_v21  ;;  %789 = vmatpush.msra.mxu1 %v764_v39 }
 0x1ac   : > { %751 = vmatpush.msra.mxu0 %v720_v23  ;;  %790 = vmatpush.msra.mxu1 %v763_v22 }
 0x1ae   : > { %752 = vmatpush.msra.mxu0 %v719_v24  ;;  %791 = vmatpush.msra.mxu1 %v762_v43 }
 0x1b0   : > { %753 = vmatpush.msra.mxu0 %v718_v25  ;;  %792 = vmatpush.msra.mxu1 %v761_v53 }
 0x1b2   : > { %793 = vmatpush.msra.mxu1 %v760_v54 }
 0x1b4   : > { %794 = vmatpush.msra.mxu1 %v759_v55 }
 0x207   : > { %v700_v33 = vpop.xlane.xlu0 %699 }
 0x208   : > { %v701_v35 = vadd.f32 1e-09, %v700_v33 }
 0x20a   : > { %1123 = vrcp.f32 %v701_v35  ;;  %v714_v44 = vand.u32 2147483648, %v701_v35  ;;  %v712_v29 = vand.u32 2147483647, %v701_v35  ;;  %vm708_vm11 = vweird.f32 %v701_v35 }
 0x20c   : > { %v715_v48 = vor.u32 1.1754944e-38, %v714_v44  ;;  %vm713_vm13 = vcmp.eq.f32.partialorder %v712_v29, 8.507059e+37 }
 0x210   : > { %v1124_v40 = vpop.eup %1123 }
 0x211   : > { %v704_v41 = vmul.f32 %v1124_v40, %v701_v35  ;;  %vm709_vm10 = vweird.f32 %v1124_v40 }
 0x212   : > { %vm710_vm12 = vmor %vm708_vm11, %vm709_vm10 }
 0x213   : > { %v705_v42 = vsub.f32 1.0, %v704_v41 }
 0x215   : > { %v706_v45 = vmul.f32 %v1124_v40, %v705_v42 }
 0x217   : > { %v707_v46 = vadd.f32 %v1124_v40, %v706_v45 }
 0x219   : > { %v711_v50 = vsel %vm710_vm12, %v1124_v40, %v707_v46 }
 0x21a   : > { %v716_v51 = vsel %vm713_vm13, %v715_v48, %v711_v50 }
 0x21b   : > { %v717_v52 = vmul.f32 %v716_v51, %v702_v47 }
 0x21d   : > { %754 = vmatmul.f32.vlgmr.msra.gmra.mxu0 %v717_v52 }
 0x29a   : > { %v755_v57 = vpop.f32.mrf.mxu0 }
 0x29b   : > { %v756_v59 = vadd.f32 %v1121_v56, %v755_v57 }
 0x29d   : > { %v758_v60 = vmax.f32 %v756_v59, 0.0 }
 0x29f   : > { %795 = vmatmul.f32.vlgmr.msra.gmra.mxu1 %v758_v60 }
 0x31c   : > { %v796_v61 = vpop.f32.mrf.mxu1 }
 0x31d   : > { %v797_v62 = vadd.f32 %v1122_v49, %v796_v61 }
 0x31f   : > { %v799_v63 = vmul.f32 %v797_v62, %v797_v62 }
 0x321   : > { %800 = vadd.xlane.f32.xlu0 %v799_v63 }
 0x394   : > { %v801_v58 = vpop.xlane.xlu0 %800 }
 0x395   : > { %v802_v0 = vmax.f32 %v801_v58, 1e-24 }
 0x397   : > { %1125 = vrsqrt.f32 %v802_v0  ;;  %vm809_vm15 = vweird.f32 %v802_v0 }
 0x39d   : > { %v1126_v1 = vpop.eup %1125 }
 0x39e   : > { %v804_v2 = vmul.f32 %v1126_v1, %v802_v0  ;;  %vm810_vm14 = vweird.f32 %v1126_v1 }
 0x39f   : > { %vm811_vm0 = vmor %vm809_vm15, %vm810_vm14 }
 0x3a0   : > { %v805_v3 = vmul.f32 %v1126_v1, %v804_v2 }
 0x3a2   : > { %v806_v4 = vmul.f32 0.5, %v805_v3 }
 0x3a4   : > { %v807_v5 = vsub.f32 1.5, %v806_v4 }
 0x3a6   : > { %v808_v6 = vmul.f32 %v1126_v1, %v807_v5 }
 0x3a8   : > { %v812_v7 = vsel %vm811_vm0, %v1126_v1, %v808_v6 }
 0x3a9   : > { %v813_v8 = vmul.f32 %v812_v7, %v797_v62 }
 0x3ab   : > { %814 = vst [vmem:[%s329_s20] sm:$0xff] %v813_v8 }
 0x3ac PF: > { %s979_s21 = sshll.u32 %s1331_s28, 3  ;;  %s1751_s18 = sld [smem:[#allocation21_spill]] }
 0x3ad   : > { %s828_s12 = sshll.u32 %s329_s20, 4  ;;  %s816_s8 = scalar_lea.sflag [#allocation5], %s327_s5  ;;  %s829_s12 = int_to_ptr.vmem [resolvable:$true] %s828_s12 }
 0x3b2   : > { %s826_s15 = scalar_lea.hbm %s1751_s18, %s979_s21  ;;  %s1237_s17 = scalar_lea.hbm %s1751_s18, 16 }
 0x3b3   : > { %s830_s16 = sshll.u32 %s826_s15, 4  ;;  %s831_s16 = int_to_ptr.hbm [resolvable:$true] %s830_s16 }
 0x3b4   : > { %s1231_s10 = sshra.s32 %s831_s16, 4  ;;  %s1232_s10 = int_to_ptr.hbm [resolvable:$true] %s1231_s10 }
 0x3b5   : > { %s1233_s27 = scalar_lea.hbm %s1232_s10, 8  ;;  %p1238_p5 = scmp.lt.s32.totalorder %s1232_s10, %s1751_s18 }
 0x3b6   : > { %p1234_p0 = scmp.ne.s32.totalorder %s1232_s10, %s1233_s27  ;;  %p1239_p6 = scmp.lt.s32.totalorder %s1237_s17, %s1233_s27 }
 0x3b8   : > { %p1235_p2 = pnand %p1234_p0, %p1458_p7  ;;  %p1240_p8 = por %p1239_p6, %p1238_p5 }
 0x3ba   : > { %p1236_p4 = pneg %p1235_p2 }
 0x3bc   : > { %p1241_p10 = pnand %p1240_p8, %p1236_p4 }
 0x3be   : > { %1244 = shalt.err (!%p1241_p10)
}
 0x3bf   : > { %993 = dma.vmem_to_hbm [thread:$0]  (%p1458_p7), %s829_s12, 128, %s831_s16, %s816_s8  }
 0x3c0 PF: > { %s1752_s5 = sld [smem:[#allocation13_spill]]  ;;  %p1015_p12 = scmp.ge.s32.totalorder %s1343_s7, 2 }
 0x3c2   : > { %p1007_p13 = pnand %p1015_p12, %p1463_p9 }
 0x3c4   : > { %p1008_p11 = pneg %p1007_p13 }
 0x3c6   : > { %s842_s20 = sand.u32 1, %s1752_s5  }
 0x3c7   : > { %s843_s21 = scalar_lea.sflag [#allocation5], %s842_s20 }
 0x3c8   : > { %1298 = dma.done.wait (%p1008_p11), %s843_s21, 128  }
 0x3c9   : > { %1300 = vsyncadd (%p1008_p11), %s843_s21, 4294967168  ;;  %s23_s7 = sadd.s32 1, %s1343_s7   ;;  %s1754_s4 = sld [smem:[#allocation16_spill]] }
 0x3ca   : > { %p20_p1 = scmp.ge.s32.totalorder %s23_s7, 8   ;;  %s1755_s14 = sld [smem:[#allocation17_spill]] }
 0x3cb   : > { %s1756_s21 = smov %s1307_s22  ;;  %s1757_s22 = smov %s1311_s23 }
 0x3cc   : > { %s1758_s23 = smov %s1516_s24  ;;  %s1759_s24 = smov %s1319_s25 }
 0x3cd   : > { %s1760_s25 = smov %s1323_s26  ;;  %s1761_s26 = smov %s1508_s9 }
 0x3ce   : > { %s1762_s27 = smov %s1335_s29  ;;  %s1763_s28 = smov %s1339_s30 }
 0x3cf   : > { %s1764_s29 = smov %s1754_s4  ;;  %22 = sbr.rel (!%p20_p1) target bundleno = 15 (0xf), region = 108 }
 0x3d0   : > { %s1765_s30 = smov %s1755_s14 }
 0x3d4   :  { %849 = vsyncpa [#allocation4], 1 }
 0x3d5   :  { %851 = vsyncpa [#allocation4 + $0x1], 1 }
 0x3d6   :  { %852 = vsyncpa [#allocation7], 1 }
 0x3d7   :  { %853 = vsyncpa [#allocation5], 1 }
 0x3d8   :  { %855 = vsyncpa [#allocation5 + $0x1], 1 }

</bundles_post_ra>
